<compile_context>
chip_gen: v5e
topology: v5e:2x2
jax: 0.10.0
libtpu: 0.0.40
codegen_flags: <defaults>
</compile_context>

<pallas_src>
import functools

import jax
import jax.numpy as jnp
from jax.experimental import pallas as pl
from jax.experimental.pallas import tpu as pltpu


def _round_up(n: int, m: int) -> int:
    return ((n + m - 1) // m) * m


def _linear_silu_kernel(x_ref, wb_ref, o_ref, *, in_features):
    x = x_ref[...]                                      # (TB, IN)      f32
    w = wb_ref[:in_features, :]                         # (IN, OUT_p)   f32 (pre-transposed)
    b = wb_ref[in_features:in_features + 1, :]          # (1,  OUT_p)   f32
    # x @ W^T + b with W already in (IN, OUT) layout -> plain dot, MXU f32 acc.
    z = jnp.dot(x, w, preferred_element_type=jnp.float32) + b
    # SiLU epilogue: exp on EUP, mul/add on VPU.
    o_ref[...] = (z * jax.nn.sigmoid(z)).astype(o_ref.dtype)


def linear_silu(x, weight, bias, *, block_rows: int = 512):
    """x: (B, IN) f32; weight: (OUT, IN) (PyTorch layout); bias: (OUT,)."""
    B, IN = x.shape
    OUT = weight.shape[0]
    OUT_p = _round_up(OUT, 128)          # lane-dense output slab

    # One-time host-side parameter prep: transpose to (IN, OUT), pad OUT to a
    # lane multiple, and pack the bias as one extra row -> single operand.
    w_t = weight.T.astype(x.dtype)                       # (IN, OUT)
    wb = jnp.zeros((IN + 1, OUT_p), dtype=x.dtype)
    wb = wb.at[:IN, :OUT].set(w_t)
    wb = wb.at[IN, :OUT].set(bias.astype(x.dtype))

    # Row tiling: big tiles amortize the per-step pipeline cost; tiny batches
    # just round up to one 8-row tile.
    TB = min(block_rows, _round_up(B, 8))
    B_p = _round_up(B, TB)
    x_p = jnp.pad(x, ((0, B_p - B), (0, 0))) if B_p != B else x

    itemsize = jnp.dtype(x.dtype).itemsize
    kernel = functools.partial(_linear_silu_kernel, in_features=IN)

    out_p = pl.pallas_call(
        kernel,
        out_shape=jax.ShapeDtypeStruct((B_p, OUT_p), x.dtype),
        grid_spec=pltpu.PrefetchScalarGridSpec(
            num_scalar_prefetch=0,
            grid=(B_p // TB,),
            in_specs=[
                # Streamed activations: one row tile per grid step.
                pl.BlockSpec((TB, IN), lambda i: (i, 0)),
                # Packed weight+bias: same block every step -> VMEM-resident.
                pl.BlockSpec((IN + 1, OUT_p), lambda i: (0, 0)),
            ],
            out_specs=pl.BlockSpec((TB, OUT_p), lambda i: (i, 0)),
        ),
        compiler_params=pltpu.CompilerParams(
            dimension_semantics=("parallel",),
        ),
        cost_estimate=pl.CostEstimate(
            flops=2 * B_p * IN * OUT_p,
            transcendentals=B_p * OUT_p,
            bytes_accessed=(x_p.size + wb.size + B_p * OUT_p) * itemsize,
        ),
    )(x_p, wb)

    # Strip batch/lane padding.
    return out_p[:B, :OUT]


def _reference(x, weight, bias):
    z = x @ weight.T + bias
    return z * jax.nn.sigmoid(z)


if __name__ == "__main__":
    key = jax.random.PRNGKey(0)
    kx, kw, kb, kx2 = jax.random.split(key, 4)

    B, IN, OUT = 2, 10, 10
    x1 = jax.random.normal(kx, (B, IN), dtype=jnp.float32)
    # Deterministic parameter init (mimic nn.Linear uniform(-1/sqrt(in), 1/sqrt(in)))
    bound = 1.0 / jnp.sqrt(jnp.float32(IN))
    weight = jax.random.uniform(kw, (OUT, IN), jnp.float32, -bound, bound)
    bias = jax.random.uniform(kb, (OUT,), jnp.float32, -bound, bound)

    # Module-sized call (B=2): single 8-row tile.
    out = linear_silu(x1, weight, bias)
    jax.block_until_ready(out)
    assert out.shape == (B, OUT)
    assert jnp.allclose(out, _reference(x1, weight, bias), atol=1e-5, rtol=1e-5)

    # Batched sanity check exercising the multi-step grid + padding path.
    x_big = jax.random.normal(kx2, (1000, IN), dtype=jnp.float32)
    out_big = linear_silu(x_big, weight, bias)
    jax.block_until_ready(out_big)
    assert out_big.shape == (1000, OUT)
    assert jnp.allclose(out_big, _reference(x_big, weight, bias), atol=1e-5, rtol=1e-5)

    print("KERNEL_OK")
</pallas_src>

<mosaic_0001>
module attributes {stable_mosaic.version = 11 : i64} {
  func.func @_linear_silu_kernel(%arg0: i32, %arg1: memref<8x10xf32, #tpu.memory_space<vmem>>, %arg2: memref<11x128xf32, #tpu.memory_space<vmem>>, %arg3: memref<8x128xf32, #tpu.memory_space<vmem>>) attributes {dimension_semantics = [#tpu.dimension_semantics<parallel>], iteration_bounds = array<i64: 1>, scalar_prefetch = 0 : i64, scratch_operands = 0 : i64, tpu.core_type = #tpu.core_type<tc>, window_params = [{transform_indices = @transform_0, window_bounds = array<i64: 8, 10>}, {pipeline_mode = #tpu.pipeline_mode<synchronous>, transform_indices = @transform_1, window_bounds = array<i64: 11, 128>}, {transform_indices = @transform_2, window_bounds = array<i64: 8, 128>}]} {
    %c0 = arith.constant 0 : index
    %c0_0 = arith.constant 0 : index
    %0 = vector.load %arg1[%c0, %c0_0] : memref<8x10xf32, #tpu.memory_space<vmem>>, vector<8x10xf32>
    %c0_1 = arith.constant 0 : index
    %c0_2 = arith.constant 0 : index
    %1 = vector.load %arg2[%c0_1, %c0_2] : memref<11x128xf32, #tpu.memory_space<vmem>>, vector<10x128xf32>
    %c10 = arith.constant 10 : index
    %c0_3 = arith.constant 0 : index
    %2 = vector.load %arg2[%c10, %c0_3] : memref<11x128xf32, #tpu.memory_space<vmem>>, vector<1x128xf32>
    %cst = arith.constant dense<0.000000e+00> : vector<8x128xf32>
    %3 = tpu.matmul %0, %1, %cst {dimension_numbers = #tpu.dot_dimension_numbers<[1], [0], [0], [1], [0, 0, 1, 1], [], []>} : vector<8x10xf32>, vector<10x128xf32>, vector<8x128xf32> -> vector<8x128xf32>
    %4 = vector.broadcast %2 : vector<1x128xf32> to vector<8x128xf32>
    %5 = arith.addf %3, %4 : vector<8x128xf32>
    %6 = arith.negf %5 : vector<8x128xf32>
    %7 = math.exp %6 : vector<8x128xf32>
    %cst_4 = arith.constant 1.000000e+00 : f32
    %8 = vector.broadcast %cst_4 : f32 to vector<8x128xf32>
    %9 = arith.addf %8, %7 : vector<8x128xf32>
    %10 = arith.divf %8, %9 : vector<8x128xf32>
    %11 = arith.mulf %5, %10 : vector<8x128xf32>
    %c0_5 = arith.constant 0 : index
    %c0_6 = arith.constant 0 : index
    %12 = vector.load %arg3[%c0_5, %c0_6] : memref<8x128xf32, #tpu.memory_space<vmem>>, vector<8x128xf32>
    tpu.vector_store %arg3[%c0_5, %c0_6], %11 {strides = array<i32>} : memref<8x128xf32, #tpu.memory_space<vmem>>, vector<8x128xf32>,
    return
  }
  func.func @transform_0(%arg0: i32) -> (i32, i32) {
    %c0_i32 = arith.constant 0 : i32
    %c0_i32_0 = arith.constant 0 : i32
    return %arg0, %c0_i32 : i32, i32
  }
  func.func @transform_1(%arg0: i32) -> (i32, i32) {
    %c0_i32 = arith.constant 0 : i32
    %c0_i32_0 = arith.constant 0 : i32
    %c0_i32_1 = arith.constant 0 : i32
    return %c0_i32, %c0_i32_0 : i32, i32
  }
  func.func @transform_2(%arg0: i32) -> (i32, i32) {
    %c0_i32 = arith.constant 0 : i32
    %c0_i32_0 = arith.constant 0 : i32
    return %arg0, %c0_i32 : i32, i32
  }
}

</mosaic_0001>

<bundles_post_ra>
// kernel: tpu_custom_call.1
= control target key start
LH: loop header
LB: loop body
LE: loop exit
PB: predicated region body
PF: predicated region fallthrough
CT: control target
= control target key end

     0   :  { %7 = vsyncpa [#allocation3], 0  ;;  %s234_s0 = inlined_call_operand.hbm [shape: f32[8,10], index: 0, kind: input, shape index: {}]   ;;  %s235_s1 = inlined_call_operand.hbm [shape: f32[11,128], index: 1, kind: input, shape index: {}]   ;;  %s236_s2 = inlined_call_operand.hbm [shape: f32[8,128], index: 2, kind: output, shape index: {}]  }
   0x1   :  { %8 = vsyncpa [#allocation6], 0 }
   0x2   :  { %9 = vsyncpa [#allocation4], 0  ;;  %s15_s11 = sshll.u32 %s234_s0, 4  ;;  %s205_s12 = smov [#allocation2]   ;;  %s16_s11 = int_to_ptr.hbm [resolvable:$true] %s15_s11 }
   0x3   :  { %s17_s13 = sshll.u32 %s205_s12, 4  ;;  %s25_s16 = sshll.u32 %s235_s1, 4  ;;  %s18_s13 = int_to_ptr.vmem [resolvable:$true] %s17_s13  ;;  %s26_s16 = int_to_ptr.hbm [resolvable:$true] %s25_s16 }
   0x4   :  { %20 = dma.hbm_to_vmem [thread:$0]  %s16_s11, 128, %s18_s13, [#allocation3]  }
   0x5   :  { %s206_s17 = smov [#allocation5]   ;;  %s207_s19 = smov 128  }
   0x6   :  { %s27_s18 = sshll.u32 %s206_s17, 4  ;;  %s208_s20 = smov 8   ;;  %s28_s18 = int_to_ptr.vmem [resolvable:$true] %s27_s18 }
   0x7   :  { %33 = dma.hbm_to_vmem [thread:$0]  %s26_s16, 256, %s28_s18, [#allocation6], %s207_s19, %s207_s19, %s208_s20  }
   0x8   :  { %199 = dma.done.wait [#allocation3], 128  }
   0x9   :  { %200 = vsyncadd [#allocation3], 4294967168 }
   0xa   :  { %201 = dma.done.wait [#allocation6], 256  }
   0xb   :  { %202 = vsyncadd [#allocation6], 4294967040  ;;  %vm51_vm0 = vcmask 1041408   ;;  %v44_v0 = vld [vmem:[#allocation5 + $0x8] sm:$0x3]  ;;  %v43_v1 = vld [vmem:[#allocation5] sm:$0xff] }
   0xc   :  { %114 = vmatpush.msk.msra.mxu0 %vm51_vm0, %v44_v0  ;;  %v42_v2 = vld [vmem:[#allocation2] sm:$0xff]  ;;  %vm47_vm1 = vcmask 80896   ;;  %v122_v3 = vld [vmem:[#allocation5 + $0xa] ss:$0 sm:$0xff]  ;;  %s209_s0 = smov [#allocation7]   ;;  %s103_s23 = sshll.u32 %s236_s2, 4  ;;  %s104_s23 = int_to_ptr.hbm [resolvable:$true] %s103_s23 }
   0xd   :  { %s101_s1 = sshll.u32 %s209_s0, 4  ;;  %s102_s1 = int_to_ptr.vmem [resolvable:$true] %s101_s1 }
   0xe   :  { %70 = vmatpush.msra.mxu0 %v43_v1 }
   0xf   :  { %115 = vmatmul.msk.f32.vlgmr.msra.gmra.mxu0 %vm47_vm1, %v42_v2 }
  0x8c   :  { %v72_v4 = vpop.f32.mrf.mxu0 }
  0x8d   :  { %v73_v5 = vadd.f32 %v122_v3, %v72_v4 }
  0x8f   :  { %v116_v6 = vmul.f32 -1.442695, %v73_v5 }
  0x91   :  { %123 = vpow2.f32 %v116_v6 }
  0x97   :  { %v124_v7 = vpop.eup %123 }
  0x98   :  { %v78_v8 = vadd.f32 1.0, %v124_v7 }
  0x9a   :  { %125 = vrcp.f32 %v78_v8  ;;  %v90_v12 = vand.u32 2147483648, %v78_v8  ;;  %v88_v14 = vand.u32 2147483647, %v78_v8  ;;  %vm84_vm3 = vweird.f32 %v78_v8 }
  0x9c   :  { %v91_v16 = vor.u32 1.1754944e-38, %v90_v12  ;;  %vm89_vm5 = vcmp.eq.f32.partialorder %v88_v14, 8.507059e+37 }
  0xa0   :  { %v126_v9 = vpop.eup %125 }
  0xa1   :  { %v80_v10 = vmul.f32 %v126_v9, %v78_v8  ;;  %vm85_vm2 = vweird.f32 %v126_v9 }
  0xa2   :  { %vm86_vm4 = vmor %vm84_vm3, %vm85_vm2 }
  0xa3   :  { %v81_v11 = vsub.f32 1.0, %v80_v10 }
  0xa5   :  { %v82_v13 = vmul.f32 %v126_v9, %v81_v11 }
  0xa7   :  { %v83_v15 = vadd.f32 %v126_v9, %v82_v13 }
  0xa9   :  { %v87_v17 = vsel %vm86_vm4, %v126_v9, %v83_v15 }
  0xaa   :  { %v92_v18 = vsel %vm89_vm5, %v91_v16, %v87_v17 }
  0xab   :  { %v94_v19 = vmul.f32 %v92_v18, %v73_v5 }
  0xad   :  { %95 = vst [vmem:[#allocation7] sm:$0xff] %v94_v19 }
  0xae   :  { %106 = dma.vmem_to_hbm [thread:$0]  %s102_s1, 128, %s104_s23, [#allocation4]  }
  0xaf   :  { %203 = dma.done.wait [#allocation4], 128  }
  0xb0   :  { %204 = vsyncadd [#allocation4], 4294967168 }
  0xb1   :  { %111 = vsyncpa [#allocation3], 1 }
  0xb2   :  { %112 = vsyncpa [#allocation6], 1 }
  0xb3   :  { %113 = vsyncpa [#allocation4], 1 }

</bundles_post_ra>
